<compile_context>
chip_gen: v7x
topology: tpu7x:2x2x1
jax: 0.10.0
libtpu: 0.0.40
codegen_flags: <defaults>
</compile_context>

<pallas_src>
import functools

import jax
import jax.numpy as jnp
from jax.experimental import pallas as pl
from jax.experimental.pallas import tpu as pltpu

OUT_LANES = 8  # dyn_out head padded to 8 output columns (pos_dim=4 sliced off)


def _round_up(n, m):
    return ((n + m - 1) // m) * m


def _mlp_kernel(x_ref, w1_ref, b1_ref, w2_ref, b2_ref, w3_ref, b3_ref,
                w4_ref, b4_ref, o_ref, *, compute_dtype):
    # Matmuls run on the MXU with f32 accumulation; bias-add / ReLU stay f32
    # on the VPU (v5e-safe).  Activation/input downcasts ride idle VPU slots.
    x = x_ref[...].astype(compute_dtype)
    h = jnp.dot(x, w1_ref[...], preferred_element_type=jnp.float32)
    h = jnp.maximum(h + b1_ref[...], 0.0)
    h = jnp.dot(h.astype(compute_dtype), w2_ref[...],
                preferred_element_type=jnp.float32)
    h = jnp.maximum(h + b2_ref[...], 0.0)
    h = jnp.dot(h.astype(compute_dtype), w3_ref[...],
                preferred_element_type=jnp.float32)
    h = jnp.maximum(h + b3_ref[...], 0.0)
    out = jnp.dot(h.astype(compute_dtype), w4_ref[...],
                  preferred_element_type=jnp.float32)
    o_ref[...] = (out + b4_ref[...]).astype(o_ref.dtype)


def prepare_params(params, compute_dtype=jnp.bfloat16):
    """One-time parameter prep (call once, outside the inference loop):
    pad the narrow dyn_out head to OUT_LANES zero columns and cast weights to
    the kernel's matmul-operand dtype."""
    w1, b1, w2, b2, w3, b3, w4, b4 = params
    hidden, pos_dim = w4.shape
    w4p = jnp.zeros((hidden, OUT_LANES), jnp.float32).at[:, :pos_dim].set(w4)
    b4p = jnp.zeros((1, OUT_LANES), jnp.float32).at[:, :pos_dim].set(b4)
    return dict(
        w1=w1.astype(compute_dtype), b1=b1.astype(jnp.float32),
        w2=w2.astype(compute_dtype), b2=b2.astype(jnp.float32),
        w3=w3.astype(compute_dtype), b3=b3.astype(jnp.float32),
        w4=w4p.astype(compute_dtype), b4=b4p.astype(jnp.float32),
        pos_dim=int(pos_dim),
    )


def dynamics_residual_forward(x, prepared, *, block_b=256):
    """x: [B, pos_dim + num_actions] float32.  Returns [B, pos_dim] float32."""
    w1, b1 = prepared["w1"], prepared["b1"]
    w2, b2 = prepared["w2"], prepared["b2"]
    w3, b3 = prepared["w3"], prepared["b3"]
    w4, b4 = prepared["w4"], prepared["b4"]
    pos_dim = prepared["pos_dim"]

    B, in_dim = x.shape
    hidden = w1.shape[1]
    compute_dtype = w1.dtype

    # Batch tile: <= block_b (vreg pressure / MXU-row streaming), but small
    # enough that the grid has >= 2 steps so both v7x TensorCores get work;
    # always a multiple of 8 sublanes.  Ragged last block is handled by Pallas
    # (cdiv grid + masked writeback), so no wrapper-side padding of x.
    tb = min(_round_up(block_b, 8), max(8, _round_up(pl.cdiv(B, 2), 8)))
    grid = (pl.cdiv(B, tb),)

    def resident(a):
        # Constant index_map -> weights/biases stay VMEM-resident across steps.
        return pl.BlockSpec(a.shape, lambda i: (0,) * a.ndim)

    weight_bytes = (in_dim * hidden + 2 * hidden * hidden
                    + hidden * OUT_LANES) * int(w1.dtype.itemsize)
    cost = pl.CostEstimate(
        flops=2 * B * (in_dim * hidden + 2 * hidden * hidden
                       + hidden * OUT_LANES),
        transcendentals=0,
        bytes_accessed=B * in_dim * 4 + B * OUT_LANES * 4 + weight_bytes,
    )

    kernel = functools.partial(_mlp_kernel, compute_dtype=compute_dtype)

    out = pl.pallas_call(
        kernel,
        out_shape=jax.ShapeDtypeStruct((B, OUT_LANES), jnp.float32),
        grid=grid,
        in_specs=[pl.BlockSpec((tb, in_dim), lambda i: (i, 0)),
                  resident(w1), resident(b1),
                  resident(w2), resident(b2),
                  resident(w3), resident(b3),
                  resident(w4), resident(b4)],
        out_specs=pl.BlockSpec((tb, OUT_LANES), lambda i: (i, 0)),
        compiler_params=pltpu.CompilerParams(
            dimension_semantics=("parallel",)),
        cost_estimate=cost,
    )(x, w1, b1, w2, b2, w3, b3, w4, b4)

    # Narrow slice 8 -> pos_dim (tiny array; downstream consumers get [B, 4]).
    return out[:, :pos_dim]


def init_params(key, num_actions=4, hidden=128, pos_dim=4, zero_dyn_out=True):
    """Parameter init mirroring DynamicsResidual.__init__ shapes.

    Weights stored transposed relative to torch: (in_features, out_features).
    dyn_out is zero-initialized when zero_dyn_out=True (as in the module);
    set False to exercise the full numerics path in tests.
    """
    in_dim = pos_dim + num_actions
    k1, k2, k3, k4, kb1, kb2, kb3, kb4 = jax.random.split(key, 8)

    def lin_init(kw, fan_in, fan_out, kb):
        bound = 1.0 / (float(fan_in) ** 0.5)
        w = jax.random.uniform(kw, (fan_in, fan_out), jnp.float32, -bound, bound)
        b = jax.random.uniform(kb, (1, fan_out), jnp.float32, -bound, bound)
        return w, b

    w1, b1 = lin_init(k1, in_dim, hidden, kb1)
    w2, b2 = lin_init(k2, hidden, hidden, kb2)
    w3, b3 = lin_init(k3, hidden, hidden, kb3)
    if zero_dyn_out:
        w4 = jnp.zeros((hidden, pos_dim), jnp.float32)
        b4 = jnp.zeros((1, pos_dim), jnp.float32)
    else:
        w4, b4 = lin_init(k4, hidden, pos_dim, kb4)
    return (w1, b1, w2, b2, w3, b3, w4, b4)


def _reference(x, params, compute_dtype=jnp.bfloat16):
    """Pure-JAX reference using the same operand-dtype / f32-accumulate scheme."""
    w1, b1, w2, b2, w3, b3, w4, b4 = params
    cd, f32 = compute_dtype, jnp.float32
    h = jnp.maximum(jnp.dot(x.astype(cd), w1.astype(cd),
                            preferred_element_type=f32) + b1, 0.0)
    h = jnp.maximum(jnp.dot(h.astype(cd), w2.astype(cd),
                            preferred_element_type=f32) + b2, 0.0)
    h = jnp.maximum(jnp.dot(h.astype(cd), w3.astype(cd),
                            preferred_element_type=f32) + b3, 0.0)
    return jnp.dot(h.astype(cd), w4.astype(cd),
                   preferred_element_type=f32) + b4


if __name__ == "__main__":
    key = jax.random.PRNGKey(0)
    kx1, kx2, kx3, kp1, kp2 = jax.random.split(key, 5)

    num_actions = 4
    pos_dim = 4           # 2 + 2, as in the module
    in_dim = pos_dim + num_actions

    # --- Test 1: bf16 operands, nonzero dyn_out, batch not a multiple of the
    #     tile (exercises ragged-last-block handling and narrow-head slicing).
    params_nz = init_params(kp1, num_actions=num_actions, pos_dim=pos_dim,
                            zero_dyn_out=False)
    prep_bf16 = prepare_params(params_nz, compute_dtype=jnp.bfloat16)
    B1 = 60
    x1 = jax.random.normal(kx1, (B1, in_dim), jnp.float32)
    out1 = dynamics_residual_forward(x1, prep_bf16)
    jax.block_until_ready(out1)
    ref1 = _reference(x1, params_nz, compute_dtype=jnp.bfloat16)
    assert out1.shape == (B1, pos_dim)
    assert jnp.allclose(out1, ref1, atol=1e-3, rtol=1e-3), \
        "mismatch vs pure-JAX reference (bf16 operands)"

    # --- Test 2: f32-operand path (closer to the PyTorch f32 Linear). ---
    prep_f32 = prepare_params(params_nz, compute_dtype=jnp.float32)
    B2 = 48
    x2 = jax.random.normal(kx2, (B2, in_dim), jnp.float32)
    out2 = dynamics_residual_forward(x2, prep_f32)
    jax.block_until_ready(out2)
    ref2 = _reference(x2, params_nz, compute_dtype=jnp.float32)
    assert out2.shape == (B2, pos_dim)
    assert jnp.allclose(out2, ref2, atol=1e-3, rtol=1e-3), \
        "mismatch vs pure-JAX reference (f32 operands)"

    # --- Test 3: module's zero-initialized dyn_out -> output is exactly 0. ---
    params_zero = init_params(kp2, num_actions=num_actions, pos_dim=pos_dim,
                              zero_dyn_out=True)
    prep_zero = prepare_params(params_zero, compute_dtype=jnp.bfloat16)
    B3 = 64
    x3 = jax.random.normal(kx3, (B3, in_dim), jnp.float32)
    out3 = dynamics_residual_forward(x3, prep_zero)
    jax.block_until_ready(out3)
    assert out3.shape == (B3, pos_dim)
    assert jnp.allclose(out3, 0.0), "zero-initialized dyn_out must give zeros"

    print("KERNEL_OK")
</pallas_src>

<mosaic_0001>
module attributes {stable_mosaic.version = 11 : i64} {
  func.func @_mlp_kernel(%arg0: i32, %arg1: memref<32x8xf32, #tpu.memory_space<vmem>>, %arg2: memref<8x128xbf16, #tpu.memory_space<vmem>>, %arg3: memref<1x128xf32, #tpu.memory_space<vmem>>, %arg4: memref<128x128xbf16, #tpu.memory_space<vmem>>, %arg5: memref<1x128xf32, #tpu.memory_space<vmem>>, %arg6: memref<128x128xbf16, #tpu.memory_space<vmem>>, %arg7: memref<1x128xf32, #tpu.memory_space<vmem>>, %arg8: memref<128x8xbf16, #tpu.memory_space<vmem>>, %arg9: memref<1x8xf32, #tpu.memory_space<vmem>>, %arg10: memref<32x8xf32, #tpu.memory_space<vmem>>) attributes {dimension_semantics = [#tpu.dimension_semantics<parallel>], iteration_bounds = array<i64: 2>, scalar_prefetch = 0 : i64, scratch_operands = 0 : i64, tpu.core_type = #tpu.core_type<tc>, window_params = [{transform_indices = @transform_0, window_bounds = array<i64: 32, 8>}, {pipeline_mode = #tpu.pipeline_mode<synchronous>, transform_indices = @transform_1, window_bounds = array<i64: 8, 128>}, {pipeline_mode = #tpu.pipeline_mode<synchronous>, transform_indices = @transform_2, window_bounds = array<i64: 1, 128>}, {pipeline_mode = #tpu.pipeline_mode<synchronous>, transform_indices = @transform_3, window_bounds = array<i64: 128, 128>}, {pipeline_mode = #tpu.pipeline_mode<synchronous>, transform_indices = @transform_4, window_bounds = array<i64: 1, 128>}, {pipeline_mode = #tpu.pipeline_mode<synchronous>, transform_indices = @transform_5, window_bounds = array<i64: 128, 128>}, {pipeline_mode = #tpu.pipeline_mode<synchronous>, transform_indices = @transform_6, window_bounds = array<i64: 1, 128>}, {pipeline_mode = #tpu.pipeline_mode<synchronous>, transform_indices = @transform_7, window_bounds = array<i64: 128, 8>}, {pipeline_mode = #tpu.pipeline_mode<synchronous>, transform_indices = @transform_8, window_bounds = array<i64: 1, 8>}, {transform_indices = @transform_9, window_bounds = array<i64: 32, 8>}]} {
    %c0 = arith.constant 0 : index
    %c0_0 = arith.constant 0 : index
    %0 = vector.load %arg1[%c0, %c0_0] : memref<32x8xf32, #tpu.memory_space<vmem>>, vector<32x8xf32>
    %1 = arith.truncf %0 : vector<32x8xf32> to vector<32x8xbf16>
    %c0_1 = arith.constant 0 : index
    %c0_2 = arith.constant 0 : index
    %2 = vector.load %arg2[%c0_1, %c0_2] : memref<8x128xbf16, #tpu.memory_space<vmem>>, vector<8x128xbf16>
    %cst = arith.constant dense<0.000000e+00> : vector<32x128xf32>
    %3 = tpu.matmul %1, %2, %cst {dimension_numbers = #tpu.dot_dimension_numbers<[1], [0], [0], [1], [0, 0, 1, 1], [], []>} : vector<32x8xbf16>, vector<8x128xbf16>, vector<32x128xf32> -> vector<32x128xf32>
    %c0_3 = arith.constant 0 : index
    %c0_4 = arith.constant 0 : index
    %4 = vector.load %arg3[%c0_3, %c0_4] : memref<1x128xf32, #tpu.memory_space<vmem>>, vector<1x128xf32>
    %5 = vector.broadcast %4 : vector<1x128xf32> to vector<32x128xf32>
    %6 = arith.addf %3, %5 : vector<32x128xf32>
    %cst_5 = arith.constant 0.000000e+00 : f32
    %7 = vector.broadcast %cst_5 : f32 to vector<32x128xf32>
    %8 = arith.maximumf %6, %7 : vector<32x128xf32>
    %9 = arith.truncf %8 : vector<32x128xf32> to vector<32x128xbf16>
    %c0_6 = arith.constant 0 : index
    %c0_7 = arith.constant 0 : index
    %10 = vector.load %arg4[%c0_6, %c0_7] : memref<128x128xbf16, #tpu.memory_space<vmem>>, vector<128x128xbf16>
    %cst_8 = arith.constant dense<0.000000e+00> : vector<32x128xf32>
    %11 = tpu.matmul %9, %10, %cst_8 {dimension_numbers = #tpu.dot_dimension_numbers<[1], [0], [0], [1], [0, 0, 1, 1], [], []>} : vector<32x128xbf16>, vector<128x128xbf16>, vector<32x128xf32> -> vector<32x128xf32>
    %c0_9 = arith.constant 0 : index
    %c0_10 = arith.constant 0 : index
    %12 = vector.load %arg5[%c0_9, %c0_10] : memref<1x128xf32, #tpu.memory_space<vmem>>, vector<1x128xf32>
    %13 = vector.broadcast %12 : vector<1x128xf32> to vector<32x128xf32>
    %14 = arith.addf %11, %13 : vector<32x128xf32>
    %cst_11 = arith.constant 0.000000e+00 : f32
    %15 = vector.broadcast %cst_11 : f32 to vector<32x128xf32>
    %16 = arith.maximumf %14, %15 : vector<32x128xf32>
    %17 = arith.truncf %16 : vector<32x128xf32> to vector<32x128xbf16>
    %c0_12 = arith.constant 0 : index
    %c0_13 = arith.constant 0 : index
    %18 = vector.load %arg6[%c0_12, %c0_13] : memref<128x128xbf16, #tpu.memory_space<vmem>>, vector<128x128xbf16>
    %cst_14 = arith.constant dense<0.000000e+00> : vector<32x128xf32>
    %19 = tpu.matmul %17, %18, %cst_14 {dimension_numbers = #tpu.dot_dimension_numbers<[1], [0], [0], [1], [0, 0, 1, 1], [], []>} : vector<32x128xbf16>, vector<128x128xbf16>, vector<32x128xf32> -> vector<32x128xf32>
    %c0_15 = arith.constant 0 : index
    %c0_16 = arith.constant 0 : index
    %20 = vector.load %arg7[%c0_15, %c0_16] : memref<1x128xf32, #tpu.memory_space<vmem>>, vector<1x128xf32>
    %21 = vector.broadcast %20 : vector<1x128xf32> to vector<32x128xf32>
    %22 = arith.addf %19, %21 : vector<32x128xf32>
    %cst_17 = arith.constant 0.000000e+00 : f32
    %23 = vector.broadcast %cst_17 : f32 to vector<32x128xf32>
    %24 = arith.maximumf %22, %23 : vector<32x128xf32>
    %25 = arith.truncf %24 : vector<32x128xf32> to vector<32x128xbf16>
    %c0_18 = arith.constant 0 : index
    %c0_19 = arith.constant 0 : index
    %26 = vector.load %arg8[%c0_18, %c0_19] : memref<128x8xbf16, #tpu.memory_space<vmem>>, vector<128x8xbf16>
    %cst_20 = arith.constant dense<0.000000e+00> : vector<32x8xf32>
    %27 = tpu.matmul %25, %26, %cst_20 {dimension_numbers = #tpu.dot_dimension_numbers<[1], [0], [0], [1], [0, 0, 1, 1], [], []>} : vector<32x128xbf16>, vector<128x8xbf16>, vector<32x8xf32> -> vector<32x8xf32>
    %c0_21 = arith.constant 0 : index
    %c0_22 = arith.constant 0 : index
    %28 = vector.load %arg9[%c0_21, %c0_22] : memref<1x8xf32, #tpu.memory_space<vmem>>, vector<1x8xf32>
    %29 = vector.broadcast %28 : vector<1x8xf32> to vector<32x8xf32>
    %30 = arith.addf %27, %29 : vector<32x8xf32>
    %c0_23 = arith.constant 0 : index
    %c0_24 = arith.constant 0 : index
    %31 = vector.load %arg10[%c0_23, %c0_24] : memref<32x8xf32, #tpu.memory_space<vmem>>, vector<32x8xf32>
    tpu.vector_store %arg10[%c0_23, %c0_24], %30 {strides = array<i32>} : memref<32x8xf32, #tpu.memory_space<vmem>>, vector<32x8xf32>,
    return
  }
  func.func @transform_0(%arg0: i32) -> (i32, i32) {
    %c0_i32 = arith.constant 0 : i32
    %c0_i32_0 = arith.constant 0 : i32
    return %arg0, %c0_i32 : i32, i32
  }
  func.func @transform_1(%arg0: i32) -> (i32, i32) {
    %c0_i32 = arith.constant 0 : i32
    %c0_i32_0 = arith.constant 0 : i32
    %c0_i32_1 = arith.constant 0 : i32
    return %c0_i32, %c0_i32_0 : i32, i32
  }
  func.func @transform_2(%arg0: i32) -> (i32, i32) {
    %c0_i32 = arith.constant 0 : i32
    %c0_i32_0 = arith.constant 0 : i32
    %c0_i32_1 = arith.constant 0 : i32
    return %c0_i32, %c0_i32_0 : i32, i32
  }
  func.func @transform_3(%arg0: i32) -> (i32, i32) {
    %c0_i32 = arith.constant 0 : i32
    %c0_i32_0 = arith.constant 0 : i32
    %c0_i32_1 = arith.constant 0 : i32
    return %c0_i32, %c0_i32_0 : i32, i32
  }
  func.func @transform_4(%arg0: i32) -> (i32, i32) {
    %c0_i32 = arith.constant 0 : i32
    %c0_i32_0 = arith.constant 0 : i32
    %c0_i32_1 = arith.constant 0 : i32
    return %c0_i32, %c0_i32_0 : i32, i32
  }
  func.func @transform_5(%arg0: i32) -> (i32, i32) {
    %c0_i32 = arith.constant 0 : i32
    %c0_i32_0 = arith.constant 0 : i32
    %c0_i32_1 = arith.constant 0 : i32
    return %c0_i32, %c0_i32_0 : i32, i32
  }
  func.func @transform_6(%arg0: i32) -> (i32, i32) {
    %c0_i32 = arith.constant 0 : i32
    %c0_i32_0 = arith.constant 0 : i32
    %c0_i32_1 = arith.constant 0 : i32
    return %c0_i32, %c0_i32_0 : i32, i32
  }
  func.func @transform_7(%arg0: i32) -> (i32, i32) {
    %c0_i32 = arith.constant 0 : i32
    %c0_i32_0 = arith.constant 0 : i32
    %c0_i32_1 = arith.constant 0 : i32
    return %c0_i32, %c0_i32_0 : i32, i32
  }
  func.func @transform_8(%arg0: i32) -> (i32, i32) {
    %c0_i32 = arith.constant 0 : i32
    %c0_i32_0 = arith.constant 0 : i32
    %c0_i32_1 = arith.constant 0 : i32
    return %c0_i32, %c0_i32_0 : i32, i32
  }
  func.func @transform_9(%arg0: i32) -> (i32, i32) {
    %c0_i32 = arith.constant 0 : i32
    %c0_i32_0 = arith.constant 0 : i32
    return %arg0, %c0_i32 : i32, i32
  }
}

</mosaic_0001>

<bundles_post_ra>
// kernel: tpu_custom_call.1
= control target key start
LH: loop header
LB: loop body
LE: loop exit
PB: predicated region body
PF: predicated region fallthrough
CT: control target
= control target key end

     0   :  { %s1080_s30 = smov 0   ;;  %s1197_s0 = inlined_call_operand.vmem [shape: f32[60,8], index: 0, kind: input, shape index: {}]   ;;  %s1198_s1 = inlined_call_operand.vmem [shape: bf16[8,128], index: 1, kind: input, shape index: {}]   ;;  %s1199_s2 = inlined_call_operand.vmem [shape: f32[1,128], index: 2, kind: input, shape index: {}]   ;;  %s1200_s3 = inlined_call_operand.vmem [shape: bf16[128,128], index: 3, kind: input, shape index: {}]   ;;  %s1201_s4 = inlined_call_operand.vmem [shape: f32[1,128], index: 4, kind: input, shape index: {}]   ;;  %s1202_s5 = inlined_call_operand.vmem [shape: bf16[128,128], index: 5, kind: input, shape index: {}]   ;;  %s1203_s6 = inlined_call_operand.vmem [shape: f32[1,128], index: 6, kind: input, shape index: {}]   ;;  %s1204_s7 = inlined_call_operand.vmem [shape: bf16[128,8], index: 7, kind: input, shape index: {}]   ;;  %s1205_s8 = inlined_call_operand.vmem [shape: f32[1,8], index: 8, kind: input, shape index: {}]   ;;  %s1206_s9 = inlined_call_operand.vmem [shape: f32[60,8], index: 9, kind: output, shape index: {}]  }
   0x1 LB: > { %s849_s10 = sadd.s32 4294967295, %s1028_s30   ;;  %p853_p0 = scmp.ge.s32.totalorder %s1028_s30, 1  ;;  %s1028_s30 = sphi %s1080_s30, %s19_s30  }
   0x2   : > { %p288_p1 = scmp.lt.s32.totalorder %s1028_s30, 3 }
   0x4   : > { %p289_p2 = pnand %p853_p0, %p288_p1 }
   0x5   : > { %v343_v0 = vld [vmem:[%s1198_s1] sm:$0xf] (!%p289_p2)  ;;  %vm358_vm0 = vcmask (!%p289_p2), 1043456   ;;  %s854_s13 = sshll.u32 (!%p289_p2), %s849_s10, 2  ;;  %v999_v3 = vld [vmem:[%s1200_s3 + $0x8] sm:$0xff] (!%p289_p2)   ;;  %v1000_v4 = vld [vmem:[%s1200_s3 + $0x10] sm:$0xff] (!%p289_p2)  }
   0x6   : > { %292 = sbr.rel (%p289_p2) target bundleno = 904 (0x388), region = 56  ;;  %v998_v1 = vld [vmem:[%s1200_s3] sm:$0xff] (!%p289_p2)   ;;  %989 = vmatprep.subr.msk.bf16.mxu0 (!%p289_p2), %vm358_vm0, %v343_v0  ;;  %v360_v2 = vsel (!%p289_p2), %vm358_vm0, %v343_v0, 0  ;;  %p325_p3 = scmp.lt.s32.totalorder (!%p289_p2), %s854_s13, 7  ;;  %v1001_v5 = vld [vmem:[%s1200_s3 + $0x18] sm:$0xff] (!%p289_p2)   ;;  %vm351_vm1 = vcmask (!%p289_p2), 64512  }
   0x7   : > { %924 = vmatpush3.bf16.msra.mxu0 (!%p289_p2), %v360_v2  ;;  %929 = vmatprep.subr.bf16.mxu1 (!%p289_p2), %v998_v1  ;;  %v1002_v12 = vld [vmem:[%s1200_s3 + $0x20] sm:$0xff] (!%p289_p2)   ;;  %v1003_v13 = vld [vmem:[%s1200_s3 + $0x28] sm:$0xff] (!%p289_p2)   ;;  %v1004_v14 = vld [vmem:[%s1200_s3 + $0x30] sm:$0xff] (!%p289_p2)  }
   0x8   : > { %930 = vmatpush3.bf16.msra.mxu1 (!%p289_p2), %v998_v1  ;;  %v1005_v15 = vld [vmem:[%s1200_s3 + $0x38] sm:$0xff] (!%p289_p2)   ;;  %v1006_v16 = vld [vmem:[%s1202_s5] sm:$0xff] (!%p289_p2)   ;;  %v1007_v17 = vld [vmem:[%s1202_s5 + $0x8] sm:$0xff] (!%p289_p2)  }
   0x9   : > { %931 = vmatprep.subr.bf16.mxu1 (!%p289_p2), %v999_v3  ;;  %949 = vmatprep.subr.bf16.mxu0 (!%p289_p2), %v1006_v16  ;;  %v1008_v18 = vld [vmem:[%s1202_s5 + $0x10] sm:$0xff] (!%p289_p2)   ;;  %v1009_v19 = vld [vmem:[%s1202_s5 + $0x18] sm:$0xff] (!%p289_p2)   ;;  %v1010_v20 = vld [vmem:[%s1202_s5 + $0x20] sm:$0xff] (!%p289_p2)  }
   0xa   : > { %v1011_v21 = vld [vmem:[%s1202_s5 + $0x28] sm:$0xff] (!%p289_p2)   ;;  %v858_v22 = vld [vmem:[%s1199_s2] ss:$0 sm:$0xff] (!%p289_p2)  ;;  %v1012_v37 = vld [vmem:[%s1202_s5 + $0x30] sm:$0xff] (!%p289_p2)  }
   0xb   : > { %v1013_v38 = vld [vmem:[%s1202_s5 + $0x38] sm:$0xff] (!%p289_p2)   ;;  %v1014_v39 = vld [vmem:[%s1204_s7] sm:$0xff] (!%p289_p2)   ;;  %v1015_v40 = vld [vmem:[%s1204_s7 + $0x8] sm:$0xff] (!%p289_p2)  }
   0xc   : > { %932 = vmatpush3.bf16.msra.mxu1 (!%p289_p2), %v999_v3  ;;  %v1016_v41 = vld [vmem:[%s1204_s7 + $0x10] sm:$0xff] (!%p289_p2)   ;;  %v1017_v42 = vld [vmem:[%s1204_s7 + $0x18] sm:$0xff] (!%p289_p2)   ;;  %v1018_v43 = vld [vmem:[%s1204_s7 + $0x20] sm:$0xff] (!%p289_p2)  }
   0xd   : > { %s1208_s13 = smov (!%p325_p3, %s854_s13), 7  ;;  %933 = vmatprep.subr.bf16.mxu1 %v1000_v4  ;;  %v1019_v44 = vld [vmem:[%s1204_s7 + $0x28] sm:$0xff]   ;;  %v861_v45 = vld [vmem:[%s1201_s4] ss:$0 sm:$0xff]  ;;  %v1020_v60 = vld [vmem:[%s1204_s7 + $0x30] sm:$0xff]  }
   0xe   : > { %s855_s20 = sshll.u32 %s1208_s13, 3  ;;  %v1021_v61 = vld [vmem:[%s1204_s7 + $0x38] sm:$0xff]   ;;  %v870_v62 = vld [vmem:[%s1203_s6] ss:$0 sm:$0xff] }
   0xf   : > { %s328_s23 = scalar_lea.vmem %s1197_s0, %s855_s20  ;;  %s334_s22 = scalar_lea.vmem %s1206_s9, %s855_s20 }
  0x10   : > { %v337_v6 = vld [vmem:[%s328_s23] sm:$0xff]  ;;  %v338_v7 = vld [vmem:[%s328_s23 + $0x8] sm:$0xff]  ;;  %v339_v8 = vld [vmem:[%s328_s23 + $0x10] sm:$0xff]  ;;  %934 = vmatpush3.bf16.msra.mxu1 %v1000_v4 }
  0x11   : > { %v341_v9 = vpack.c.bf16 %v338_v7, %v337_v6  ;;  %v340_v10 = vld [vmem:[%s328_s23 + $0x18] sm:$0xff]  ;;  %935 = vmatprep.subr.bf16.mxu1 %v1001_v5 }
  0x12   : > { %v342_v11 = vpack.c.bf16 %v340_v10, %v339_v8 }
  0x13   : > { %925 = vmatprep.mubr.msk.bf16.mxu0 %vm351_vm1, %v341_v9 }
  0x14   : > { %926 = vmatmul.mubr.msk.bf16.vlgmr.msra.gmra.mrb[0].mxu0 %vm351_vm1, %v342_v11  ;;  %936 = vmatpush3.bf16.msra.mxu1 %v1001_v5 }
  0x15   : > { %937 = vmatprep.subr.bf16.mxu1 %v1002_v12  ;;  %950 = vmatpush3.bf16.msra.mxu0 %v1006_v16 }
  0x16   : > { %951 = vmatprep.subr.bf16.mxu0 %v1007_v17 }
  0x18   : > { %938 = vmatpush3.bf16.msra.mxu1 %v1002_v12 }
  0x19   : > { %939 = vmatprep.subr.bf16.mxu1 %v1003_v13  ;;  %952 = vmatpush3.bf16.msra.mxu0 %v1007_v17 }
  0x1a   : > { %953 = vmatprep.subr.bf16.mxu0 %v1008_v18 }
  0x1c   : > { %940 = vmatpush3.bf16.msra.mxu1 %v1003_v13  ;;  %v879_v13 = vld [vmem:[%s1205_s8] ss:$0 sm:$0xff] }
  0x1d   : > { %941 = vmatprep.subr.bf16.mxu1 %v1004_v14  ;;  %954 = vmatpush3.bf16.msra.mxu0 %v1008_v18 }
  0x1e   : > { %955 = vmatprep.subr.bf16.mxu0 %v1009_v19 }
  0x20   : > { %942 = vmatpush3.bf16.msra.mxu1 %v1004_v14 }
  0x21   : > { %943 = vmatprep.subr.bf16.mxu1 %v1005_v15  ;;  %956 = vmatpush3.bf16.msra.mxu0 %v1009_v19 }
  0x22   : > { %957 = vmatprep.subr.bf16.mxu0 %v1010_v20 }
  0x24   : > { %944 = vmatpush3.bf16.msra.mxu1 %v1005_v15 }
  0x25   : > { %958 = vmatpush3.bf16.msra.mxu0 %v1010_v20  ;;  %969 = vmatprep.subr.bf16.mxu1 %v1014_v39 }
  0x26   : > { %959 = vmatprep.subr.bf16.mxu0 %v1011_v21 }
  0x29   : > { %960 = vmatpush3.bf16.msra.mxu0 %v1011_v21 }
  0x2a   : > { %961 = vmatprep.subr.bf16.mxu0 %v1012_v37 }
  0x2d   : > { %962 = vmatpush3.bf16.msra.mxu0 %v1012_v37 }
  0x2e   : > { %963 = vmatprep.subr.bf16.mxu0 %v1013_v38 }
  0x31   : > { %964 = vmatpush3.bf16.msra.mxu0 %v1013_v38 }
  0xe7   : > { %v927_v23 = vpop.f32.mrb[0].mxu0 }
  0xe8   : > { %v405_v24 = vadd.f32 %v927_v23, %v858_v22  ;;  %v396_v25 = vpop.f32.mrb[1].mxu0 }
  0xe9   : > { %v397_v26 = vadd.f32 %v858_v22, %v396_v25  ;;  %v928_v27 = vpop.f32.mrb[2].mxu0 }
  0xea   : > { %v408_v28 = vadd.f32 %v928_v27, %v858_v22  ;;  %v399_v29 = vpop.f32.mrb[3].mxu0  ;;  %v413_v31 = vmax.f32 %v405_v24, 0.0 }
  0xeb   : > { %v400_v30 = vadd.f32 %v858_v22, %v399_v29  ;;  %v411_v33 = vmax.f32 %v397_v26, 0.0 }
  0xec   : > { %v414_v32 = vmax.f32 %v408_v28, 0.0 }
  0xed   : > { %v412_v34 = vmax.f32 %v400_v30, 0.0 }
  0xee   : > { %v416_v35 = vpack.c.bf16 %v414_v32, %v413_v31 }
  0xef   : > { %v415_v36 = vpack.c.bf16 %v412_v34, %v411_v33 }
  0xf1   : > { %945 = vmatprep.mubr.bf16.mxu1 %v415_v36 }
  0xf2   : > { %946 = vmatmul.mubr.bf16.vlgmr.msra.gmra.mrb[0].mxu1 %v416_v35 }
  0xf3   : > { %970 = vmatpush3.bf16.msra.mxu1 %v1014_v39 }
  0xf4   : > { %971 = vmatprep.subr.bf16.mxu1 %v1015_v40 }
  0xf7   : > { %972 = vmatpush3.bf16.msra.mxu1 %v1015_v40 }
  0xf8   : > { %973 = vmatprep.subr.bf16.mxu1 %v1016_v41 }
  0xfb   : > { %974 = vmatpush3.bf16.msra.mxu1 %v1016_v41 }
  0xfc   : > { %975 = vmatprep.subr.bf16.mxu1 %v1017_v42 }
  0xff   : > { %976 = vmatpush3.bf16.msra.mxu1 %v1017_v42 }
 0x100   : > { %977 = vmatprep.subr.bf16.mxu1 %v1018_v43 }
 0x103   : > { %978 = vmatpush3.bf16.msra.mxu1 %v1018_v43 }
 0x104   : > { %979 = vmatprep.subr.bf16.mxu1 %v1019_v44 }
 0x107   : > { %980 = vmatpush3.bf16.msra.mxu1 %v1019_v44 }
 0x108   : > { %981 = vmatprep.subr.bf16.mxu1 %v1020_v60 }
 0x10b   : > { %982 = vmatpush3.bf16.msra.mxu1 %v1020_v60 }
 0x10c   : > { %983 = vmatprep.subr.bf16.mxu1 %v1021_v61 }
 0x10f   : > { %984 = vmatpush3.bf16.msra.mxu1 %v1021_v61 }
 0x1c5   : > { %v947_v46 = vpop.f32.mrb[0].mxu1 }
 0x1c6   : > { %v531_v47 = vadd.f32 %v947_v46, %v861_v45  ;;  %v522_v48 = vpop.f32.mrb[1].mxu1 }
 0x1c7   : > { %v523_v49 = vadd.f32 %v861_v45, %v522_v48  ;;  %v948_v50 = vpop.f32.mrb[2].mxu1 }
 0x1c8   : > { %v534_v51 = vadd.f32 %v948_v50, %v861_v45  ;;  %v525_v52 = vpop.f32.mrb[3].mxu1  ;;  %v539_v54 = vmax.f32 %v531_v47, 0.0 }
 0x1c9   : > { %v526_v53 = vadd.f32 %v861_v45, %v525_v52  ;;  %v537_v56 = vmax.f32 %v523_v49, 0.0 }
 0x1ca   : > { %v540_v55 = vmax.f32 %v534_v51, 0.0 }
 0x1cb   : > { %v538_v57 = vmax.f32 %v526_v53, 0.0 }
 0x1cc   : > { %v542_v58 = vpack.c.bf16 %v540_v55, %v539_v54 }
 0x1cd   : > { %v541_v59 = vpack.c.bf16 %v538_v57, %v537_v56 }
 0x1cf   : > { %965 = vmatprep.mubr.bf16.mxu0 %v541_v59 }
 0x1d0   : > { %966 = vmatmul.mubr.bf16.vlgmr.msra.gmra.mrb[4].mxu0 %v542_v58 }
 0x2a3   : > { %v967_v63 = vpop.f32.mrb[4].mxu0 }
 0x2a4   : > { %v657_v0 = vadd.f32 %v967_v63, %v870_v62  ;;  %v648_v1 = vpop.f32.mrb[5].mxu0 }
 0x2a5   : > { %v649_v2 = vadd.f32 %v870_v62, %v648_v1  ;;  %v968_v3 = vpop.f32.mrb[6].mxu0 }
 0x2a6   : > { %v660_v4 = vadd.f32 %v968_v3, %v870_v62  ;;  %v651_v5 = vpop.f32.mrb[7].mxu0  ;;  %v665_v7 = vmax.f32 %v657_v0, 0.0 }
 0x2a7   : > { %v652_v6 = vadd.f32 %v870_v62, %v651_v5  ;;  %v663_v9 = vmax.f32 %v649_v2, 0.0 }
 0x2a8   : > { %v666_v8 = vmax.f32 %v660_v4, 0.0 }
 0x2a9   : > { %v664_v10 = vmax.f32 %v652_v6, 0.0 }
 0x2aa   : > { %v668_v11 = vpack.c.bf16 %v666_v8, %v665_v7 }
 0x2ab   : > { %v667_v12 = vpack.c.bf16 %v664_v10, %v663_v9 }
 0x2ad   : > { %985 = vmatprep.mubr.bf16.mxu1 %v667_v12 }
 0x2ae   : > { %986 = vmatmul.mubr.bf16.vlgmr.msra.gmra.mrb[4].mxu1 %v668_v11 }
 0x381   : > { %v987_v14 = vpop.f32.mrb[4].mxu1 }
 0x382   : > { %v774_v15 = vpop.f32.mrb[5].mxu1  ;;  %v783_v20 = vadd.f32 %v987_v14, %v879_v13 }
 0x383   : > { %v775_v16 = vadd.f32 %v879_v13, %v774_v15  ;;  %v988_v17 = vpop.f32.mrb[6].mxu1 }
 0x384   : > { %v777_v18 = vpop.f32.mrb[7].mxu1  ;;  %v786_v21 = vadd.f32 %v988_v17, %v879_v13  ;;  %791 = vst.msk [vmem:[%s334_s22 + $0x10] sm:$0xff] %vm351_vm1, %v783_v20 }
 0x385   : > { %789 = vst.msk [vmem:[%s334_s22] sm:$0xff] %vm351_vm1, %v775_v16  ;;  %v778_v19 = vadd.f32 %v879_v13, %v777_v18 }
 0x386   : > { %792 = vst.msk [vmem:[%s334_s22 + $0x18] sm:$0xff] %vm351_vm1, %v786_v21 }
 0x387   : > { %790 = vst.msk [vmem:[%s334_s22 + $0x8] sm:$0xff] %vm351_vm1, %v778_v19 }
 0x388 PF: > { %s19_s30 = sadd.s32 1, %s1028_s30  }
 0x389   : > { %p16_p4 = scmp.ge.s32.totalorder %s19_s30, 4  }
 0x38b   :  { %18 = sbr.rel (!%p16_p4) target bundleno = 1 (0x1), region = 86 }

</bundles_post_ra>
